<compile_context>
chip_gen: v7x
topology: tpu7x:2x2x1
jax: 0.10.0
libtpu: 0.0.40
codegen_flags: <defaults>
</compile_context>

<pallas_src>
import math
import functools

import jax
import jax.numpy as jnp
from jax import lax
from jax.experimental import pallas as pl
from jax.experimental.pallas import tpu as pltpu


# murmur3-style finalizer constants, written as signed int32 two's-complement.
_GOLDEN = -1640531527   # 0x9E3779B9
_MIX1 = -2048144789     # 0x85EBCA6B
_MIX2 = -1028477371     # 0xC2B2AE35


# ----------------------------------------------------------------------------
# Kernels (operate on (ts, bb, D) x/out tiles and a (ts, 1, D) pe tile)
# ----------------------------------------------------------------------------
def _pe_add_kernel(scale_ref, x_ref, pe_ref, o_ref):
    # scale_ref: SMEM (1,) f32 ; x_ref/o_ref: (ts, bb, D) ; pe_ref: (ts, 1, D)
    s = scale_ref[0]
    val = x_ref[...].astype(jnp.float32) + s * pe_ref[...]
    o_ref[...] = val.astype(o_ref.dtype)


def _pe_add_dropout_kernel(p, batch, d_model, ts, bb,
                           scale_ref, seed_ref, x_ref, pe_ref, o_ref):
    """out = dropout(x + scale*pe) with a stateless in-kernel hash RNG.

    Inverted dropout with keep-prob (1 - p), deterministic given
    (seed, global element position). All vector RNG math is int32 VPU work;
    the grid/seed-dependent part is folded into one scalar `base`.
    """
    s = scale_ref[0]
    val = x_ref[...].astype(jnp.float32) + s * pe_ref[...]

    i = pl.program_id(0)   # sequence-tile index
    j = pl.program_id(1)   # batch-tile index

    # Global element id = ((i*ts + r) * B + (j*bb + b)) * D + c.
    # int32 wraparound is fine for a hash (tensors with > 2^31 elements would
    # repeat the mask; practically irrelevant).
    base = (i * ts * batch + j * bb) * d_model + seed_ref[0] * jnp.int32(_GOLDEN)
    r_ids = lax.broadcasted_iota(jnp.int32, val.shape, 0)
    b_ids = lax.broadcasted_iota(jnp.int32, val.shape, 1)
    c_ids = lax.broadcasted_iota(jnp.int32, val.shape, 2)
    h = base + r_ids * jnp.int32(batch * d_model) + b_ids * jnp.int32(d_model) + c_ids

    # murmur3 finalizer (avalanche); logical shifts on the int32 bit pattern.
    h = h ^ lax.shift_right_logical(h, jnp.int32(16))
    h = h * jnp.int32(_MIX1)
    h = h ^ lax.shift_right_logical(h, jnp.int32(13))
    h = h * jnp.int32(_MIX2)
    h = h ^ lax.shift_right_logical(h, jnp.int32(16))

    # h ~ uniform over the full signed int32 range; compare against a signed
    # threshold directly (no `& 0x7FFFFFFF` mask op):
    #   P(h < thr) = p  with  thr = round(p * 2^32) - 2^31.
    thr = int(round(p * 2.0 ** 32)) - 2 ** 31
    thr = max(-(2 ** 31), min(thr, 2 ** 31 - 1))
    keep = h >= jnp.int32(thr)

    inv_keep = jnp.float32(1.0 / (1.0 - p))
    o_ref[...] = jnp.where(keep, val * inv_keep, 0.0).astype(o_ref.dtype)


# ----------------------------------------------------------------------------
# Parameter / buffer init (matches PyTorch __init__)
# ----------------------------------------------------------------------------
def make_positional_encoding_table(d_model: int, max_len: int = 1000) -> jnp.ndarray:
    """pe buffer of shape (max_len, 1, d_model), float32. Handles odd d_model."""
    position = jnp.arange(0, max_len, dtype=jnp.float32)[:, None]              # (L,1)
    div_term = jnp.exp(
        jnp.arange(0, d_model, 2, dtype=jnp.float32) * (-math.log(10000.0) / d_model)
    )                                                                           # (ceil(D/2),)
    args = position * div_term                                                  # (L, ceil(D/2))
    pe = jnp.zeros((max_len, d_model), dtype=jnp.float32)
    pe = pe.at[:, 0::2].set(jnp.sin(args))
    pe = pe.at[:, 1::2].set(jnp.cos(args[:, : d_model // 2]))
    return pe[:, None, :]                                                       # (L,1,D)


# ----------------------------------------------------------------------------
# Block-size heuristic
# ----------------------------------------------------------------------------
def _choose_blocks(S: int, B: int, D: int, itemsize: int):
    """Pick (ts, bb) so one x block is ~4 MiB and the grid keeps >= 2 steps."""
    budget = 4 << 20  # bytes per x block; 2*(x+out+pe) stays well under 32 MiB
    if B <= 8 or 8 * B * D * itemsize <= budget:
        bb = B
    else:
        bb = max(8, min((budget // (8 * D * itemsize)) // 8 * 8, (B // 8) * 8))
    rows = budget // max(1, bb * D * itemsize)
    ts = min(S, max(8, (rows // 8) * 8))
    # v7x has 2 TensorCores sharding the parallel grid; avoid a 1-step grid
    # when there is enough sequence to split.
    if (-(-S // ts)) * (-(-B // bb)) < 2 and S >= 16:
        ts = -(-S // 2)
    return ts, bb


# ----------------------------------------------------------------------------
# Module-equivalent forward
# ----------------------------------------------------------------------------
def positional_encoding_forward(
    x: jnp.ndarray,          # (S, B, D) float32 or bfloat16
    scale: jnp.ndarray,      # (1,) float32  (nn.Parameter(torch.ones(1)))
    pe: jnp.ndarray,         # (max_len, 1, D) float32
    *,
    dropout_p: float = 0.1,
    training: bool = False,
    seed: int = 0,
    use_pallas: bool | None = None,
) -> jnp.ndarray:
    S, B, D = x.shape
    max_len = pe.shape[0]
    assert max_len >= S and pe.shape[-1] == D

    apply_dropout = training and dropout_p > 0.0
    if apply_dropout and dropout_p >= 1.0:
        return jnp.zeros_like(x)

    if use_pallas is None:
        # Launch overhead dwarfs a few KB of work; let XLA fuse tiny shapes.
        use_pallas = (S * B * D) >= (1 << 16)

    if not use_pallas:
        # NOTE: this path's dropout mask (jax.random) differs from the Pallas
        # hash mask for the same seed; both are valid inverted dropout.
        val = x.astype(jnp.float32) + scale[0] * pe[:S]
        if apply_dropout:
            keep = jax.random.bernoulli(jax.random.PRNGKey(seed), 1.0 - dropout_p, val.shape)
            val = jnp.where(keep, val / (1.0 - dropout_p), 0.0)
        return val.astype(x.dtype)

    # ---- Pallas path: native (S, B, D) layout, no wrapper transposes ----
    itemsize = jnp.dtype(x.dtype).itemsize
    ts, bb = _choose_blocks(S, B, D, itemsize)
    grid = (pl.cdiv(S, ts), pl.cdiv(B, bb))

    x_spec = pl.BlockSpec((ts, bb, D), lambda i, j: (i, j, 0))
    pe_spec = pl.BlockSpec((ts, 1, D), lambda i, j: (i, 0, 0))
    out_spec = pl.BlockSpec((ts, bb, D), lambda i, j: (i, j, 0))
    smem_spec = pl.BlockSpec(memory_space=pltpu.MemorySpace.SMEM)

    # Double-buffered VMEM footprint (x + out + pe blocks) plus headroom;
    # stays within v7x's 64 MiB physical / 32 MiB scoped default.
    blk_bytes = ts * bb * D * itemsize
    pe_bytes = ts * D * 4
    vmem_limit = int(min(max(2 * (2 * blk_bytes + pe_bytes) + (4 << 20), 32 << 20),
                         64 << 20))

    scale_arg = scale.astype(jnp.float32).reshape(1)
    pe_arg = pe.astype(jnp.float32)   # (max_len, 1, D), passed as-is

    if apply_dropout:
        kernel = functools.partial(_pe_add_dropout_kernel, float(dropout_p),
                                   int(B), int(D), int(ts), int(bb))
        in_specs = [smem_spec, smem_spec, x_spec, pe_spec]
        args = (scale_arg, jnp.asarray([seed], dtype=jnp.int32), x, pe_arg)
    else:
        kernel = _pe_add_kernel
        in_specs = [smem_spec, x_spec, pe_spec]
        args = (scale_arg, x, pe_arg)

    return pl.pallas_call(
        kernel,
        out_shape=jax.ShapeDtypeStruct((S, B, D), x.dtype),
        grid=grid,
        in_specs=in_specs,
        out_specs=out_spec,
        compiler_params=pltpu.CompilerParams(
            dimension_semantics=("parallel", "parallel"),
            vmem_limit_bytes=vmem_limit,
        ),
    )(*args)


# ----------------------------------------------------------------------------
# Demo / self-check
# ----------------------------------------------------------------------------
if __name__ == "__main__":
    S, B, D = 8, 2, 32          # seq=8, batch=2, d_model=32
    MAX_LEN = 1000
    P = 0.1

    key = jax.random.PRNGKey(0)
    x = jax.random.normal(key, (S, B, D), dtype=jnp.float32)

    scale = jnp.ones((1,), dtype=jnp.float32)           # nn.Parameter(torch.ones(1))
    pe = make_positional_encoding_table(D, MAX_LEN)     # registered buffer

    # Eval-mode forward (dropout = identity). Force the Pallas kernel.
    out = positional_encoding_forward(
        x, scale, pe, dropout_p=P, training=False, use_pallas=True)
    out = jax.block_until_ready(out)

    ref = x + scale[0] * pe[:S]
    assert out.shape == (S, B, D)
    assert jnp.allclose(out, ref, atol=1e-5), "mismatch vs reference"

    # Training-mode (dropout) kernel, deterministic given the seed.
    out_train = positional_encoding_forward(
        x, scale, pe, dropout_p=P, training=True, seed=123, use_pallas=True)
    out_train = jax.block_until_ready(out_train)
    assert out_train.shape == (S, B, D)

    # Every element is either dropped (0) or scaled by 1/(1-p).
    expected = ref / (1.0 - P)
    ok = jnp.isclose(out_train, 0.0, atol=1e-6) | jnp.isclose(
        out_train, expected, rtol=1e-4, atol=1e-4)
    assert bool(jnp.all(ok)), "dropout output is neither 0 nor scaled value"

    # Multi-tile sanity check (grid > 1 along the sequence axis).
    S2, B2, D2 = 300, 4, 128
    x2 = jax.random.normal(jax.random.PRNGKey(1), (S2, B2, D2), dtype=jnp.float32)
    pe2 = make_positional_encoding_table(D2, MAX_LEN)
    out2 = positional_encoding_forward(
        x2, scale, pe2, dropout_p=P, training=False, use_pallas=True)
    out2 = jax.block_until_ready(out2)
    ref2 = x2 + scale[0] * pe2[:S2]
    assert jnp.allclose(out2, ref2, atol=1e-5), "multi-tile mismatch vs reference"

    print("KERNEL_OK")
</pallas_src>

<mosaic_0001>
module attributes {stable_mosaic.version = 11 : i64} {
  func.func @_pe_add_kernel(%arg0: i32, %arg1: i32, %arg2: memref<1xf32, #tpu.memory_space<smem>>, %arg3: memref<8x2x32xf32, #tpu.memory_space<vmem>>, %arg4: memref<8x1x32xf32, #tpu.memory_space<vmem>>, %arg5: memref<8x2x32xf32, #tpu.memory_space<vmem>>) attributes {dimension_semantics = [#tpu.dimension_semantics<parallel>, #tpu.dimension_semantics<parallel>], iteration_bounds = array<i64: 1, 1>, scalar_prefetch = 0 : i64, scratch_operands = 0 : i64, tpu.core_type = #tpu.core_type<tc>, window_params = [{transform_indices = @transform_0, window_bounds = array<i64: 1>}, {transform_indices = @transform_1, window_bounds = array<i64: 8, 2, 32>}, {transform_indices = @transform_2, window_bounds = array<i64: 8, 1, 32>}, {transform_indices = @transform_3, window_bounds = array<i64: 8, 2, 32>}]} {
    %c0 = arith.constant 0 : index
    %0 = memref.load %arg2[%c0] : memref<1xf32, #tpu.memory_space<smem>>
    %c0_0 = arith.constant 0 : index
    %c0_1 = arith.constant 0 : index
    %c0_2 = arith.constant 0 : index
    %1 = vector.load %arg3[%c0_0, %c0_1, %c0_2] : memref<8x2x32xf32, #tpu.memory_space<vmem>>, vector<8x2x32xf32>
    %c0_3 = arith.constant 0 : index
    %c0_4 = arith.constant 0 : index
    %c0_5 = arith.constant 0 : index
    %2 = vector.load %arg4[%c0_3, %c0_4, %c0_5] : memref<8x1x32xf32, #tpu.memory_space<vmem>>, vector<8x1x32xf32>
    %3 = vector.broadcast %0 : f32 to vector<8x1x32xf32>
    %4 = arith.mulf %3, %2 : vector<8x1x32xf32>
    %5 = vector.broadcast %4 : vector<8x1x32xf32> to vector<8x2x32xf32>
    %6 = arith.addf %1, %5 : vector<8x2x32xf32>
    %c0_6 = arith.constant 0 : index
    %c0_7 = arith.constant 0 : index
    %c0_8 = arith.constant 0 : index
    %7 = vector.load %arg5[%c0_6, %c0_7, %c0_8] : memref<8x2x32xf32, #tpu.memory_space<vmem>>, vector<8x2x32xf32>
    tpu.vector_store %arg5[%c0_6, %c0_7, %c0_8], %6 {strides = array<i32>} : memref<8x2x32xf32, #tpu.memory_space<vmem>>, vector<8x2x32xf32>,
    return
  }
  func.func @transform_0(%arg0: i32, %arg1: i32) -> i32 {
    %c0_i32 = arith.constant 0 : i32
    %c0_i32_0 = arith.constant 0 : i32
    return %c0_i32 : i32
  }
  func.func @transform_1(%arg0: i32, %arg1: i32) -> (i32, i32, i32) {
    %c0_i32 = arith.constant 0 : i32
    %c0_i32_0 = arith.constant 0 : i32
    return %arg0, %arg1, %c0_i32 : i32, i32, i32
  }
  func.func @transform_2(%arg0: i32, %arg1: i32) -> (i32, i32, i32) {
    %c0_i32 = arith.constant 0 : i32
    %c0_i32_0 = arith.constant 0 : i32
    %c0_i32_1 = arith.constant 0 : i32
    return %arg0, %c0_i32, %c0_i32_0 : i32, i32, i32
  }
  func.func @transform_3(%arg0: i32, %arg1: i32) -> (i32, i32, i32) {
    %c0_i32 = arith.constant 0 : i32
    %c0_i32_0 = arith.constant 0 : i32
    return %arg0, %arg1, %c0_i32 : i32, i32, i32
  }
}

</mosaic_0001>

<bundles_post_ra>
// kernel: tpu_custom_call.1
= control target key start
LH: loop header
LB: loop body
LE: loop exit
PB: predicated region body
PF: predicated region fallthrough
CT: control target
= control target key end

     0   :  { %v50_v2 = vlaneseq  ;;  %vm98_vm0 = vcmask 254976   ;;  %s244_s0 = inlined_call_operand.<no memory space> [shape: f32[1], index: 0, kind: input, shape index: {}]   ;;  %s245_s1 = inlined_call_operand.vmem [shape: f32[8,2,32], index: 1, kind: input, shape index: {}]   ;;  %s246_s2 = inlined_call_operand.vmem [shape: f32[1000,1,32], index: 2, kind: input, shape index: {}]   ;;  %s247_s3 = inlined_call_operand.hbm [shape: f32[8,2,32], index: 3, kind: output, shape index: {}]  }
   0x1   :  { %v25_v0 = vld [vmem:[%s246_s2] sm:$0x1]  ;;  %v33_v1 = vstv %s244_s0  ;;  %v26_v3 = vld [vmem:[%s246_s2 + $0x1] sm:$0x1]  ;;  %v27_v7 = vld [vmem:[%s246_s2 + $0x2] sm:$0x1] }
   0x2   :  { %v34_v4 = vmul.f32 %v33_v1, %v25_v0  ;;  %v51_v5 = vshrl.u32 %v50_v2, 7  ;;  %v35_v6 = vmul.f32 %v33_v1, %v26_v3  ;;  %v17_v8 = vld [vmem:[%s245_s1] sm:$0x3]  ;;  %v18_v9 = vld [vmem:[%s245_s1 + $0x2] sm:$0x3]  ;;  %v36_v10 = vmul.f32 %v33_v1, %v27_v7 }
   0x3   :  { %v28_v11 = vld [vmem:[%s246_s2 + $0x3] sm:$0x1]  ;;  %v29_v12 = vld [vmem:[%s246_s2 + $0x4] sm:$0x1]  ;;  %v30_v17 = vld [vmem:[%s246_s2 + $0x5] sm:$0x1] }
   0x4   :  { %v52_v13 = vsub.s32 0, %v51_v5  ;;  %v19_v14 = vld [vmem:[%s245_s1 + $0x4] sm:$0x3]  ;;  %v37_v15 = vmul.f32 %v33_v1, %v28_v11  ;;  %v38_v16 = vmul.f32 %v33_v1, %v29_v12  ;;  %v20_v18 = vld [vmem:[%s245_s1 + $0x6] sm:$0x3]  ;;  %v39_v20 = vmul.f32 %v33_v1, %v30_v17 }
   0x5   :  { %v21_v19 = vld [vmem:[%s245_s1 + $0x8] sm:$0x3]  ;;  %v31_v21 = vld [vmem:[%s246_s2 + $0x6] sm:$0x1]  ;;  %v22_v26 = vld [vmem:[%s245_s1 + $0xa] sm:$0x3] }
   0x6   :  { %v53_v22 = vrot.slane %v34_v4, %v52_v13  ;;  %v57_v23 = vrot.slane %v35_v6, %v52_v13  ;;  %v61_v24 = vrot.slane %v36_v10, %v52_v13  ;;  %v65_v25 = vrot.slane %v37_v15, %v52_v13  ;;  %v32_v27 = vld [vmem:[%s246_s2 + $0x7] sm:$0x1] }
   0x7   :  { %9 = vsyncpa [#allocation4], 0  ;;  %v69_v28 = vrot.slane %v38_v16, %v52_v13  ;;  %v73_v29 = vrot.slane %v39_v20, %v52_v13  ;;  %v40_v30 = vmul.f32 %v33_v1, %v31_v21  ;;  %v41_v31 = vmul.f32 %v33_v1, %v32_v27  ;;  %s150_s14 = smov [#allocation3]   ;;  %v23_v36 = vld [vmem:[%s245_s1 + $0xc] sm:$0x3] }
   0x8   :  { %s112_s15 = sshll.u32 %s150_s14, 4  ;;  %v90_v32 = vadd.f32 %v53_v22, %v17_v8  ;;  %v91_v33 = vadd.f32 %v57_v23, %v18_v9  ;;  %v92_v34 = vadd.f32 %v61_v24, %v19_v14  ;;  %v93_v35 = vadd.f32 %v65_v25, %v20_v18  ;;  %v24_v37 = vld [vmem:[%s245_s1 + $0xe] sm:$0x3]  ;;  %s113_s15 = int_to_ptr.vmem [resolvable:$true] %s112_s15 }
   0x9   :  { %v94_v38 = vadd.f32 %v69_v28, %v21_v19  ;;  %v95_v39 = vadd.f32 %v73_v29, %v22_v26  ;;  %v77_v40 = vrot.slane %v40_v30, %v52_v13  ;;  %v81_v41 = vrot.slane %v41_v31, %v52_v13  ;;  %s126_s1 = scalar_lea.vmem %s113_s15, 256  ;;  %p131_p1 = scmp.lt.s32.totalorder %s113_s15, %s113_s15 }
   0xa   :  { %99 = vst.msk [vmem:[#allocation3] sm:$0x3] %vm98_vm0, %v90_v32  ;;  %100 = vst.msk [vmem:[#allocation3 + $0x2] sm:$0x3] %vm98_vm0, %v91_v33  ;;  %p127_p0 = scmp.ne.s32.totalorder %s113_s15, %s126_s1  ;;  %p132_p2 = scmp.lt.s32.totalorder %s126_s1, %s126_s1 }
   0xb   :  { %101 = vst.msk [vmem:[#allocation3 + $0x4] sm:$0x3] %vm98_vm0, %v92_v34  ;;  %102 = vst.msk [vmem:[#allocation3 + $0x6] sm:$0x3] %vm98_vm0, %v93_v35  ;;  %v96_v42 = vadd.f32 %v77_v40, %v23_v36  ;;  %v97_v43 = vadd.f32 %v81_v41, %v24_v37 }
   0xc   :  { %103 = vst.msk [vmem:[#allocation3 + $0x8] sm:$0x3] %vm98_vm0, %v94_v38  ;;  %104 = vst.msk [vmem:[#allocation3 + $0xa] sm:$0x3] %vm98_vm0, %v95_v39  ;;  %p133_p3 = por %p132_p2, %p131_p1 }
   0xd   :  { %105 = vst.msk [vmem:[#allocation3 + $0xc] sm:$0x3] %vm98_vm0, %v96_v42  ;;  %106 = vst.msk [vmem:[#allocation3 + $0xe] sm:$0x3] %vm98_vm0, %v97_v43 }
   0xe   :  { %p134_p4 = pnand %p133_p3, %p127_p0 }
  0x10   :  { %137 = shalt.err (!%p134_p4)
}
  0x11   :  { %s138_s21 = scalar_lea.hbm %s247_s3, 256 }
  0x12   :  { %p139_p5 = scmp.ne.s32.totalorder %s247_s3, %s138_s21  ;;  %p142_p6 = scmp.lt.u32.totalorder %s138_s21, %s247_s3 }
  0x14   :  { %p144_p7 = pnand %p142_p6, %p139_p5 }
  0x16   :  { %147 = shalt.err (!%p144_p7)
}
  0x17   :  { %s151_s25 = smov 32   ;;  %s152_s26 = smov 2  }
  0x18   :  { %118 = dma.vmem_to_hbm [thread:$0]  %s113_s15, 256, %s247_s3, [#allocation4], %s151_s25, %s151_s25, %s152_s26  }
  0x19   :  { %148 = dma.done.wait [#allocation4], 256  }
  0x1a   :  { %149 = vsyncadd [#allocation4], 4294967040 }
  0x1b   :  { %122 = vsyncpa [#allocation4], 1 }

</bundles_post_ra>
